<compile_context>
chip_gen: v6e
topology: v6e:2x2x1
jax: 0.10.0
libtpu: 0.0.40
codegen_flags: <defaults>
</compile_context>

<pallas_src>
import jax
import jax.numpy as jnp
from jax.experimental import pallas as pl
from jax.experimental.pallas import tpu as pltpu


# ---------------------------------------------------------------------------
# Quantization setup (equivalent of QLORA.__init__) — plain JAX, done once.
# Stores integer codes (int8) + scalar scales instead of dequantized f32.
# ---------------------------------------------------------------------------
def quantize_weight_int(weight, bits=4):
    """W_nf4 == q / scale, with q stored as int8 codes in [-2^(b-1), 2^(b-1)-1]."""
    absmax = jnp.max(jnp.abs(weight))
    scale = (2 ** (bits - 1) - 1) / absmax
    q = jnp.clip(jnp.round(weight * scale),
                 -(2 ** (bits - 1)), 2 ** (bits - 1) - 1).astype(jnp.int8)
    return q, scale


def double_quantization_int(w_nf4, bits=8):
    """c_kbit_2 == q / c_fp32_1, with q stored as int8 codes."""
    absmax = jnp.max(jnp.abs(w_nf4))
    c_fp32_1 = (2 ** (bits - 1) - 1) / absmax
    q = jnp.clip(jnp.round(w_nf4 * c_fp32_1),
                 -(2 ** (bits - 1)), 2 ** (bits - 1) - 1).astype(jnp.int8)
    return c_fp32_1, q


def pack_weight_product(q4, q8):
    """Offline packing: single int16 stream of the exact q4*q8 integer product.

    |q4| <= 8 and |q8| <= 128, so |q4*q8| <= 1024 fits int16 exactly; this uses
    the stored q8 codes so the dequantized values are bit-identical to streaming
    both code arrays.
    """
    return q4.astype(jnp.int16) * q8.astype(jnp.int16)


# ---------------------------------------------------------------------------
# Pallas kernel: one int16->f32 convert per weight element (VPU), base matmul
# on the MXU with f32 accumulation, scalar 1/s4 rescale of the small result,
# then add the pre-computed (hoisted) LoRA tile.
# ---------------------------------------------------------------------------
def qlora_kernel(inv_s4_ref, x_ref, w16_ref, lora_ref, y_ref):
    inv_s4 = inv_s4_ref[0, 0]                       # scalar 1/s4 from SMEM

    # Dequant: W_deq * s4 == q4 * q8 (exact in int16 -> f32). Single convert.
    w_q = w16_ref[...].astype(jnp.float32)

    # Base matmul on the MXU, f32 accumulation; rescale the (M, tn) result
    # (cheaper than rescaling the whole (K, tn) weight tile).
    y = jnp.dot(x_ref[...], w_q, preferred_element_type=jnp.float32) * inv_s4

    # Hoisted rank-r LoRA term: just an elementwise add of the streamed tile.
    y_ref[...] = (y + lora_ref[...]).astype(y_ref.dtype)


def qlora_forward(x, w16, s4, l1, l2, *, tn=512):
    """Y = X @ ((q4*q8)/s4) + (X @ L1) @ L2, with w16 = q4*q8 packed offline."""
    M, K = x.shape
    Kw, N = w16.shape
    assert Kw == K, "weight inner dim must match X"
    tn = min(tn, N)
    assert N % tn == 0, "output_dim must be divisible by the column tile"
    assert tn % 128 == 0, "column tile must stay lane-dense (multiple of 128)"

    # Pad the batch to a multiple of 8 sublanes so output stores are unmasked
    # full-sublane vst; sliced back after the call (free to arrange out here).
    Mp = ((M + 7) // 8) * 8
    if Mp != M:
        x = jnp.pad(x, ((0, Mp - M), (0, 0)))

    # Hoisted LoRA term: two tiny rank-r matmuls in XLA (here 16x512x4 and
    # 16x4x512, ~20 KiB result). Identical for every output tile and matches
    # the reference accumulation order exactly.
    lora = jnp.dot(jnp.dot(x, l1, preferred_element_type=jnp.float32), l2,
                   preferred_element_type=jnp.float32)            # (Mp, N)

    inv_s4 = (1.0 / jnp.asarray(s4, jnp.float32)).reshape(1, 1)   # scalar -> SMEM

    y = pl.pallas_call(
        qlora_kernel,
        out_shape=jax.ShapeDtypeStruct((Mp, N), jnp.float32),
        grid_spec=pltpu.PrefetchScalarGridSpec(
            num_scalar_prefetch=0,
            grid=(N // tn,),                       # (1,) at the demo shapes
            in_specs=[
                pl.BlockSpec(memory_space=pltpu.MemorySpace.SMEM),  # 1/s4 scalar
                pl.BlockSpec((Mp, K), lambda j: (0, 0)),            # X (resident)
                pl.BlockSpec((K, tn), lambda j: (0, j)),            # q4*q8 (int16)
                pl.BlockSpec((Mp, tn), lambda j: (0, j)),           # hoisted LoRA
            ],
            out_specs=pl.BlockSpec((Mp, tn), lambda j: (0, j)),
        ),
        compiler_params=pltpu.CompilerParams(
            # N-tile axis independent across steps; shards across v7x's 2 TCs
            # once N/tn >= 2 (single step at the demo shapes).
            dimension_semantics=("parallel",),
            # Per step: ~2 bufs * K*tn*2B (int16 stream) + K*tn*4B (f32 w_q)
            # + X/lora/out tiles. Demo total ~2.5 MiB; 32 MiB fits all chips.
            vmem_limit_bytes=32 * 1024 * 1024,
        ),
    )(inv_s4, x, w16, lora)

    return y[:M] if Mp != M else y


# ---------------------------------------------------------------------------
# Main
# ---------------------------------------------------------------------------
if __name__ == "__main__":
    # Shapes straight from the module spec (already small).
    batch = 10
    input_dim = 512
    output_dim = 512
    lora_rank = 4

    key = jax.random.PRNGKey(0)
    k_x, k_w, k_l1, k_l2 = jax.random.split(key, 4)

    x = jax.random.normal(k_x, (batch, input_dim), jnp.float32)

    # Parameter init (mirrors QLORA.__init__), stored compressed:
    #   W_nf4    == q4 / s4
    #   c_kbit_2 == q8 / c_fp32_1
    w_raw = jax.random.normal(k_w, (input_dim, output_dim), jnp.float32)
    q4, s4 = quantize_weight_int(w_raw, bits=4)
    w_nf4 = q4.astype(jnp.float32) / s4
    c_fp32_1, q8 = double_quantization_int(w_nf4, bits=8)
    c_kbit_2 = q8.astype(jnp.float32) / c_fp32_1

    # Offline: fold the two code arrays into one int16 stream (exact product).
    w16 = pack_weight_product(q4, q8)

    l1 = jax.random.normal(k_l1, (input_dim, lora_rank), jnp.float32)
    l2 = jax.random.normal(k_l2, (lora_rank, output_dim), jnp.float32)

    y = qlora_forward(x, w16, s4, l1, l2)          # tn=N=512 -> grid=(1,)
    y = jax.block_until_ready(y)

    # Pure-JAX reference following the torch module's math path exactly.
    w_deq = (w_nf4 * c_fp32_1) * c_kbit_2
    y_ref = x @ w_deq + (x @ l1) @ l2

    max_err = float(jnp.max(jnp.abs(y - y_ref)))
    scale = float(jnp.max(jnp.abs(y_ref)))
    assert max_err <= 1e-4 * scale + 1e-3, f"mismatch vs reference: {max_err} (scale {scale})"

    print("KERNEL_OK")
</pallas_src>

<mosaic_0001>
module attributes {stable_mosaic.version = 11 : i64} {
  func.func @qlora_kernel(%arg0: i32, %arg1: memref<1x1xf32, #tpu.memory_space<smem>>, %arg2: memref<16x512xf32, #tpu.memory_space<vmem>>, %arg3: memref<512x512xi16, #tpu.memory_space<vmem>>, %arg4: memref<16x512xf32, #tpu.memory_space<vmem>>, %arg5: memref<16x512xf32, #tpu.memory_space<vmem>>) attributes {dimension_semantics = [#tpu.dimension_semantics<parallel>], iteration_bounds = array<i64: 1>, scalar_prefetch = 0 : i64, scratch_operands = 0 : i64, tpu.core_type = #tpu.core_type<tc>, window_params = [{transform_indices = @transform_0, window_bounds = array<i64: 1, 1>}, {pipeline_mode = #tpu.pipeline_mode<synchronous>, transform_indices = @transform_1, window_bounds = array<i64: 16, 512>}, {transform_indices = @transform_2, window_bounds = array<i64: 512, 512>}, {transform_indices = @transform_3, window_bounds = array<i64: 16, 512>}, {transform_indices = @transform_4, window_bounds = array<i64: 16, 512>}]} {
    %c0 = arith.constant 0 : index
    %c0_0 = arith.constant 0 : index
    %0 = memref.load %arg1[%c0, %c0_0] : memref<1x1xf32, #tpu.memory_space<smem>>
    %c0_1 = arith.constant 0 : index
    %c0_2 = arith.constant 0 : index
    %1 = vector.load %arg3[%c0_1, %c0_2] : memref<512x512xi16, #tpu.memory_space<vmem>>, vector<512x512xi16>
    %2 = arith.sitofp %1 : vector<512x512xi16> to vector<512x512xf32>
    %c0_3 = arith.constant 0 : index
    %c0_4 = arith.constant 0 : index
    %3 = vector.load %arg2[%c0_3, %c0_4] : memref<16x512xf32, #tpu.memory_space<vmem>>, vector<16x512xf32>
    %cst = arith.constant dense<0.000000e+00> : vector<16x512xf32>
    %4 = tpu.matmul %3, %2, %cst {dimension_numbers = #tpu.dot_dimension_numbers<[1], [0], [0], [1], [0, 0, 1, 1], [], []>} : vector<16x512xf32>, vector<512x512xf32>, vector<16x512xf32> -> vector<16x512xf32>
    %5 = vector.broadcast %0 : f32 to vector<16x512xf32>
    %6 = arith.mulf %4, %5 : vector<16x512xf32>
    %c0_5 = arith.constant 0 : index
    %c0_6 = arith.constant 0 : index
    %7 = vector.load %arg4[%c0_5, %c0_6] : memref<16x512xf32, #tpu.memory_space<vmem>>, vector<16x512xf32>
    %8 = arith.addf %6, %7 : vector<16x512xf32>
    %c0_7 = arith.constant 0 : index
    %c0_8 = arith.constant 0 : index
    %9 = vector.load %arg5[%c0_7, %c0_8] : memref<16x512xf32, #tpu.memory_space<vmem>>, vector<16x512xf32>
    tpu.vector_store %arg5[%c0_7, %c0_8], %8 {strides = array<i32>} : memref<16x512xf32, #tpu.memory_space<vmem>>, vector<16x512xf32>,
    return
  }
  func.func @transform_0(%arg0: i32) -> (i32, i32) {
    %c0_i32 = arith.constant 0 : i32
    %c0_i32_0 = arith.constant 0 : i32
    %c0_i32_1 = arith.constant 0 : i32
    return %c0_i32, %c0_i32_0 : i32, i32
  }
  func.func @transform_1(%arg0: i32) -> (i32, i32) {
    %c0_i32 = arith.constant 0 : i32
    %c0_i32_0 = arith.constant 0 : i32
    %c0_i32_1 = arith.constant 0 : i32
    return %c0_i32, %c0_i32_0 : i32, i32
  }
  func.func @transform_2(%arg0: i32) -> (i32, i32) {
    %c0_i32 = arith.constant 0 : i32
    %c0_i32_0 = arith.constant 0 : i32
    return %c0_i32, %arg0 : i32, i32
  }
  func.func @transform_3(%arg0: i32) -> (i32, i32) {
    %c0_i32 = arith.constant 0 : i32
    %c0_i32_0 = arith.constant 0 : i32
    return %c0_i32, %arg0 : i32, i32
  }
  func.func @transform_4(%arg0: i32) -> (i32, i32) {
    %c0_i32 = arith.constant 0 : i32
    %c0_i32_0 = arith.constant 0 : i32
    return %c0_i32, %arg0 : i32, i32
  }
}

</mosaic_0001>

<bundles_post_ra>
// kernel: tpu_custom_call.1
= control target key start
LH: loop header
LB: loop body
LE: loop exit
PB: predicated region body
PF: predicated region fallthrough
CT: control target
= control target key end

     0   :  { %10 = vsyncpa [#allocation4], 0  ;;  %s1235_s0 = inlined_call_operand.<no memory space> [shape: f32[1,1], index: 0, kind: input, shape index: {}]   ;;  %s1236_s1 = inlined_call_operand.hbm [shape: f32[16,512], index: 1, kind: input, shape index: {}]   ;;  %s1237_s2 = inlined_call_operand.hbm [shape: s16[512,512], index: 2, kind: input, shape index: {}]   ;;  %s1238_s3 = inlined_call_operand.hbm [shape: f32[16,512], index: 3, kind: input, shape index: {}]   ;;  %s1239_s4 = inlined_call_operand.hbm [shape: f32[16,512], index: 4, kind: output, shape index: {}]  }
   0x1   :  { %11 = vsyncpa [#allocation7], 0 }
   0x2   :  { %12 = vsyncpa [#allocation5], 0  ;;  %s1162_s15 = smov [#allocation6]  }
   0x3   :  { %s32_s16 = sshll.u32 %s1162_s15, 4  ;;  %s33_s16 = int_to_ptr.vmem [resolvable:$true] %s32_s16 }
   0x4   :  { %s1084_s17 = scalar_lea.vmem %s33_s16, 16384  ;;  %p1089_p1 = scmp.lt.s32.totalorder %s33_s16, %s33_s16 }
   0x5   :  { %p1085_p0 = scmp.ne.s32.totalorder %s33_s16, %s1084_s17  ;;  %p1090_p2 = scmp.lt.s32.totalorder %s1084_s17, %s1084_s17 }
   0x7   :  { %p1091_p3 = por %p1090_p2, %p1089_p1 }
   0x9   :  { %p1092_p4 = pnand %p1091_p3, %p1085_p0 }
   0xb   :  { %1095 = shalt.err (!%p1092_p4)
}
   0xc   :  { %s1163_s18 = smov 256   ;;  %s1164_s19 = smov 16  }
   0xd   :  { %38 = dma.hbm_to_vmem [thread:$0]  %s1237_s2, 16384, %s33_s16, [#allocation7], %s1163_s18, %s1163_s18, %s1164_s19  }
   0xe   :  { %s1165_s22 = smov [#allocation3]  }
   0xf   :  { %s20_s23 = sshll.u32 %s1165_s22, 4  ;;  %s21_s23 = int_to_ptr.vmem [resolvable:$true] %s20_s23 }
  0x10   :  { %s1104_s24 = scalar_lea.vmem %s21_s23, 1024  ;;  %p1109_p6 = scmp.lt.s32.totalorder %s21_s23, %s21_s23 }
  0x11   :  { %p1105_p5 = scmp.ne.s32.totalorder %s21_s23, %s1104_s24  ;;  %p1110_p7 = scmp.lt.s32.totalorder %s1104_s24, %s1104_s24 }
  0x13   :  { %p1111_p8 = por %p1110_p7, %p1109_p6 }
  0x15   :  { %p1112_p9 = pnand %p1111_p8, %p1105_p5 }
  0x17   :  { %1115 = shalt.err (!%p1112_p9)
}
  0x18   :  { %s1166_s25 = smov 512   ;;  %s1167_s26 = smov 32  }
  0x19   :  { %26 = dma.hbm_to_vmem [thread:$0]  %s1236_s1, 1024, %s21_s23, [#allocation4], %s1166_s25, %s1166_s25, %s1167_s26  }
  0x1a   :  { %s1168_s2 = smov [#allocation8]  }
  0x1b   :  { %s44_s29 = sshll.u32 %s1168_s2, 4  ;;  %s45_s29 = int_to_ptr.vmem [resolvable:$true] %s44_s29 }
  0x1c   :  { %s1124_s30 = scalar_lea.vmem %s45_s29, 1024  ;;  %p1129_p11 = scmp.lt.s32.totalorder %s45_s29, %s45_s29 }
  0x1d   :  { %p1125_p10 = scmp.ne.s32.totalorder %s45_s29, %s1124_s30  ;;  %p1130_p12 = scmp.lt.s32.totalorder %s1124_s30, %s1124_s30 }
  0x1f   :  { %p1131_p13 = por %p1130_p12, %p1129_p11 }
  0x21   :  { %p1132_p0 = pnand %p1131_p13, %p1125_p10 }
  0x23   :  { %1135 = shalt.err (!%p1132_p0)
}
  0x24   :  { %50 = dma.hbm_to_vmem [thread:$0]  %s1238_s3, 1024, %s45_s29, [#allocation7], %s1166_s25, %s1166_s25, %s1167_s26  }
  0x25   :  { %1156 = dma.done.wait [#allocation4], 1024  }
  0x26   :  { %1157 = vsyncadd [#allocation4], 4294966272 }
  0x27   :  { %1158 = dma.done.wait [#allocation7], 17408  }
  0x28   :  { %1159 = vsyncadd [#allocation7], 4294949888  ;;  %v91_v0 = vld [vmem:[#allocation6 + $0xf0] sm:$0xff]  ;;  %v89_v2 = vld [vmem:[#allocation6 + $0xe0] sm:$0xff] }
  0x29   :  { %v155_v1 = vld [vmem:[#allocation6 + $0x2f0] sm:$0xff]  ;;  %v250_v3 = vunpack.c.h.b16 %v91_v0  ;;  %v249_v5 = vunpack.c.l.b16 %v91_v0  ;;  %v153_v7 = vld [vmem:[#allocation6 + $0x2e0] sm:$0xff]  ;;  %v246_v8 = vunpack.c.h.b16 %v89_v2  ;;  %v245_v10 = vunpack.c.l.b16 %v89_v2 }
  0x2a   :  { %v378_v4 = vunpack.c.h.b16 %v155_v1  ;;  %v377_v6 = vunpack.c.l.b16 %v155_v1  ;;  %v374_v9 = vunpack.c.h.b16 %v153_v7  ;;  %v373_v11 = vunpack.c.l.b16 %v153_v7  ;;  %v87_v12 = vld [vmem:[#allocation6 + $0xd0] sm:$0xff]  ;;  %v85_v18 = vld [vmem:[#allocation6 + $0xc0] sm:$0xff] }
  0x2b   :  { %v151_v13 = vld [vmem:[#allocation6 + $0x2d0] sm:$0xff]  ;;  %v506_v14 = vcvt.s32.f32 %v250_v3  ;;  %v505_v16 = vcvt.s32.f32 %v249_v5  ;;  %v149_v19 = vld [vmem:[#allocation6 + $0x2c0] sm:$0xff]  ;;  %v502_v20 = vcvt.s32.f32 %v246_v8  ;;  %v501_v22 = vcvt.s32.f32 %v245_v10 }
  0x2c   :  { %v634_v15 = vcvt.s32.f32 %v378_v4  ;;  %v633_v17 = vcvt.s32.f32 %v377_v6  ;;  %v630_v21 = vcvt.s32.f32 %v374_v9  ;;  %v629_v23 = vcvt.s32.f32 %v373_v11  ;;  %v83_v32 = vld [vmem:[#allocation6 + $0xb0] sm:$0xff]  ;;  %v81_v38 = vld [vmem:[#allocation6 + $0xa0] sm:$0xff] }
  0x2d   :  { %709 = vmatprep.subr.mxu0 %v506_v14  ;;  %v242_v24 = vunpack.c.h.b16 %v87_v12  ;;  %v370_v25 = vunpack.c.h.b16 %v151_v13  ;;  %v241_v26 = vunpack.c.l.b16 %v87_v12  ;;  %v369_v27 = vunpack.c.l.b16 %v151_v13  ;;  %v147_v33 = vld [vmem:[#allocation6 + $0x2b0] sm:$0xff]  ;;  %v145_v39 = vld [vmem:[#allocation6 + $0x2a0] sm:$0xff] }
  0x2e   :  { %786 = vmatprep.subr.mxu1 %v634_v15  ;;  %710 = vmatpush1.msra.mxu0 %v505_v16  ;;  %v238_v28 = vunpack.c.h.b16 %v85_v18  ;;  %v366_v29 = vunpack.c.h.b16 %v149_v19  ;;  %v237_v30 = vunpack.c.l.b16 %v85_v18  ;;  %v365_v31 = vunpack.c.l.b16 %v149_v19  ;;  %v79_v52 = vld [vmem:[#allocation6 + $0x90] sm:$0xff]  ;;  %v77_v58 = vld [vmem:[#allocation6 + $0x80] sm:$0xff] }
  0x2f   :  { %787 = vmatpush1.msra.mxu1 %v633_v17  ;;  %711 = vmatprep.subr.mxu0 %v502_v20  ;;  %v498_v34 = vcvt.s32.f32 %v242_v24  ;;  %v626_v35 = vcvt.s32.f32 %v370_v25  ;;  %v497_v36 = vcvt.s32.f32 %v241_v26  ;;  %v625_v37 = vcvt.s32.f32 %v369_v27  ;;  %v143_v53 = vld [vmem:[#allocation6 + $0x290] sm:$0xff]  ;;  %v141_v59 = vld [vmem:[#allocation6 + $0x280] sm:$0xff] }
  0x30   :  { %788 = vmatprep.subr.mxu1 %v630_v21  ;;  %712 = vmatpush1.msra.mxu0 %v501_v22  ;;  %v494_v40 = vcvt.s32.f32 %v238_v28  ;;  %v622_v41 = vcvt.s32.f32 %v366_v29  ;;  %v493_v42 = vcvt.s32.f32 %v237_v30  ;;  %v621_v43 = vcvt.s32.f32 %v365_v31  ;;  %v75_v8 = vld [vmem:[#allocation6 + $0x70] sm:$0xff]  ;;  %v73_v14 = vld [vmem:[#allocation6 + $0x60] sm:$0xff] }
  0x31   :  { %789 = vmatpush1.msra.mxu1 %v629_v23  ;;  %713 = vmatprep.subr.mxu0 %v498_v34  ;;  %v234_v44 = vunpack.c.h.b16 %v83_v32  ;;  %v362_v45 = vunpack.c.h.b16 %v147_v33  ;;  %v233_v46 = vunpack.c.l.b16 %v83_v32  ;;  %v361_v47 = vunpack.c.l.b16 %v147_v33  ;;  %v139_v9 = vld [vmem:[#allocation6 + $0x270] sm:$0xff]  ;;  %v137_v15 = vld [vmem:[#allocation6 + $0x260] sm:$0xff] }
  0x32   :  { %790 = vmatprep.subr.mxu1 %v626_v35  ;;  %714 = vmatpush1.msra.mxu0 %v497_v36  ;;  %v230_v48 = vunpack.c.h.b16 %v81_v38  ;;  %v358_v49 = vunpack.c.h.b16 %v145_v39  ;;  %v229_v50 = vunpack.c.l.b16 %v81_v38  ;;  %v357_v51 = vunpack.c.l.b16 %v145_v39  ;;  %v71_v28 = vld [vmem:[#allocation6 + $0x50] sm:$0xff]  ;;  %v69_v34 = vld [vmem:[#allocation6 + $0x40] sm:$0xff] }
  0x33   :  { %791 = vmatpush1.msra.mxu1 %v625_v37  ;;  %715 = vmatprep.subr.mxu0 %v494_v40  ;;  %v490_v54 = vcvt.s32.f32 %v234_v44  ;;  %v618_v55 = vcvt.s32.f32 %v362_v45  ;;  %v489_v56 = vcvt.s32.f32 %v233_v46  ;;  %v617_v57 = vcvt.s32.f32 %v361_v47  ;;  %v135_v29 = vld [vmem:[#allocation6 + $0x250] sm:$0xff]  ;;  %v133_v35 = vld [vmem:[#allocation6 + $0x240] sm:$0xff] }
  0x34   :  { %792 = vmatprep.subr.mxu1 %v622_v41  ;;  %716 = vmatpush1.msra.mxu0 %v493_v42  ;;  %v486_v60 = vcvt.s32.f32 %v230_v48  ;;  %v614_v61 = vcvt.s32.f32 %v358_v49  ;;  %v485_v62 = vcvt.s32.f32 %v229_v50  ;;  %v613_v63 = vcvt.s32.f32 %v357_v51  ;;  %v67_v48 = vld [vmem:[#allocation6 + $0x30] sm:$0xff] }
  0x35   :  { %793 = vmatpush1.msra.mxu1 %v621_v43  ;;  %717 = vmatprep.subr.mxu0 %v490_v54  ;;  %v226_v0 = vunpack.c.h.b16 %v79_v52  ;;  %v354_v1 = vunpack.c.h.b16 %v143_v53  ;;  %v225_v2 = vunpack.c.l.b16 %v79_v52  ;;  %v353_v3 = vunpack.c.l.b16 %v143_v53  ;;  %v131_v49 = vld [vmem:[#allocation6 + $0x230] sm:$0xff]  ;;  %v65_v54 = vld [vmem:[#allocation6 + $0x20] sm:$0xff] }
  0x36   :  { %794 = vmatprep.subr.mxu1 %v618_v55  ;;  %718 = vmatpush1.msra.mxu0 %v489_v56  ;;  %v222_v4 = vunpack.c.h.b16 %v77_v58  ;;  %v350_v5 = vunpack.c.h.b16 %v141_v59  ;;  %v221_v6 = vunpack.c.l.b16 %v77_v58  ;;  %v349_v7 = vunpack.c.l.b16 %v141_v59  ;;  %v129_v55 = vld [vmem:[#allocation6 + $0x220] sm:$0xff] }
  0x37   :  { %795 = vmatpush1.msra.mxu1 %v617_v57  ;;  %719 = vmatprep.subr.mxu0 %v486_v60  ;;  %v482_v10 = vcvt.s32.f32 %v226_v0  ;;  %v610_v11 = vcvt.s32.f32 %v354_v1  ;;  %v481_v12 = vcvt.s32.f32 %v225_v2  ;;  %v609_v13 = vcvt.s32.f32 %v353_v3 }
  0x38   :  { %796 = vmatprep.subr.mxu1 %v614_v61  ;;  %720 = vmatpush1.msra.mxu0 %v485_v62  ;;  %v478_v16 = vcvt.s32.f32 %v222_v4  ;;  %v606_v17 = vcvt.s32.f32 %v350_v5  ;;  %v477_v18 = vcvt.s32.f32 %v221_v6  ;;  %v605_v19 = vcvt.s32.f32 %v349_v7  ;;  %v63_v4 = vld [vmem:[#allocation6 + $0x10] sm:$0xff] }
  0x39   :  { %797 = vmatpush1.msra.mxu1 %v613_v63  ;;  %721 = vmatprep.subr.mxu0 %v482_v10  ;;  %v218_v20 = vunpack.c.h.b16 %v75_v8  ;;  %v346_v21 = vunpack.c.h.b16 %v139_v9  ;;  %v217_v22 = vunpack.c.l.b16 %v75_v8  ;;  %v345_v23 = vunpack.c.l.b16 %v139_v9  ;;  %v127_v5 = vld [vmem:[#allocation6 + $0x210] sm:$0xff]  ;;  %v61_v10 = vld [vmem:[#allocation6] sm:$0xff] }
  0x3a   :  { %798 = vmatprep.subr.mxu1 %v610_v11  ;;  %722 = vmatpush1.msra.mxu0 %v481_v12  ;;  %v214_v24 = vunpack.c.h.b16 %v73_v14  ;;  %v342_v25 = vunpack.c.h.b16 %v137_v15  ;;  %v213_v26 = vunpack.c.l.b16 %v73_v14  ;;  %v341_v27 = vunpack.c.l.b16 %v137_v15  ;;  %v125_v11 = vld [vmem:[#allocation6 + $0x200] sm:$0xff] }
  0x3b   :  { %799 = vmatpush1.msra.mxu1 %v609_v13  ;;  %723 = vmatprep.subr.mxu0 %v478_v16  ;;  %v474_v30 = vcvt.s32.f32 %v218_v20  ;;  %v602_v31 = vcvt.s32.f32 %v346_v21  ;;  %v473_v32 = vcvt.s32.f32 %v217_v22  ;;  %v601_v33 = vcvt.s32.f32 %v345_v23 }
  0x3c   :  { %800 = vmatprep.subr.mxu1 %v606_v17  ;;  %724 = vmatpush1.msra.mxu0 %v477_v18  ;;  %v470_v36 = vcvt.s32.f32 %v214_v24  ;;  %v598_v37 = vcvt.s32.f32 %v342_v25  ;;  %v469_v38 = vcvt.s32.f32 %v213_v26  ;;  %v597_v39 = vcvt.s32.f32 %v341_v27  ;;  %v123_v24 = vld [vmem:[#allocation6 + $0x1f0] sm:$0xff] }
  0x3d   :  { %801 = vmatpush1.msra.mxu1 %v605_v19  ;;  %725 = vmatprep.subr.mxu0 %v474_v30  ;;  %v210_v40 = vunpack.c.h.b16 %v71_v28  ;;  %v338_v41 = vunpack.c.h.b16 %v135_v29  ;;  %v209_v42 = vunpack.c.l.b16 %v71_v28  ;;  %v337_v43 = vunpack.c.l.b16 %v135_v29  ;;  %v187_v25 = vld [vmem:[#allocation6 + $0x3f0] sm:$0xff]  ;;  %v121_v30 = vld [vmem:[#allocation6 + $0x1e0] sm:$0xff] }
  0x3e   :  { %802 = vmatprep.subr.mxu1 %v602_v31  ;;  %726 = vmatpush1.msra.mxu0 %v473_v32  ;;  %v206_v44 = vunpack.c.h.b16 %v69_v34  ;;  %v334_v45 = vunpack.c.h.b16 %v133_v35  ;;  %v205_v46 = vunpack.c.l.b16 %v69_v34  ;;  %v333_v47 = vunpack.c.l.b16 %v133_v35  ;;  %v185_v31 = vld [vmem:[#allocation6 + $0x3e0] sm:$0xff] }
  0x3f   :  { %803 = vmatpush1.msra.mxu1 %v601_v33  ;;  %727 = vmatprep.subr.mxu0 %v470_v36  ;;  %v466_v50 = vcvt.s32.f32 %v210_v40  ;;  %v594_v51 = vcvt.s32.f32 %v338_v41  ;;  %v465_v52 = vcvt.s32.f32 %v209_v42  ;;  %v593_v53 = vcvt.s32.f32 %v337_v43 }
  0x40   :  { %804 = vmatprep.subr.mxu1 %v598_v37  ;;  %728 = vmatpush1.msra.mxu0 %v469_v38  ;;  %v462_v56 = vcvt.s32.f32 %v206_v44  ;;  %v590_v57 = vcvt.s32.f32 %v334_v45  ;;  %v461_v58 = vcvt.s32.f32 %v205_v46  ;;  %v589_v59 = vcvt.s32.f32 %v333_v47  ;;  %v119_v44 = vld [vmem:[#allocation6 + $0x1d0] sm:$0xff] }
  0x41   :  { %805 = vmatpush1.msra.mxu1 %v597_v39  ;;  %729 = vmatprep.subr.mxu0 %v466_v50  ;;  %v202_v60 = vunpack.c.h.b16 %v67_v48  ;;  %v330_v61 = vunpack.c.h.b16 %v131_v49  ;;  %v201_v62 = vunpack.c.l.b16 %v67_v48  ;;  %v329_v63 = vunpack.c.l.b16 %v131_v49  ;;  %v183_v45 = vld [vmem:[#allocation6 + $0x3d0] sm:$0xff]  ;;  %v117_v50 = vld [vmem:[#allocation6 + $0x1c0] sm:$0xff] }
  0x42   :  { %806 = vmatprep.subr.mxu1 %v594_v51  ;;  %730 = vmatpush1.msra.mxu0 %v465_v52  ;;  %v198_v0 = vunpack.c.h.b16 %v65_v54  ;;  %v326_v1 = vunpack.c.h.b16 %v129_v55  ;;  %v197_v2 = vunpack.c.l.b16 %v65_v54  ;;  %v325_v3 = vunpack.c.l.b16 %v129_v55  ;;  %v181_v51 = vld [vmem:[#allocation6 + $0x3c0] sm:$0xff] }
  0x43   :  { %807 = vmatpush1.msra.mxu1 %v593_v53  ;;  %731 = vmatprep.subr.mxu0 %v462_v56  ;;  %v458_v6 = vcvt.s32.f32 %v202_v60  ;;  %v586_v7 = vcvt.s32.f32 %v330_v61  ;;  %v457_v8 = vcvt.s32.f32 %v201_v62  ;;  %v585_v9 = vcvt.s32.f32 %v329_v63 }
  0x44   :  { %808 = vmatprep.subr.mxu1 %v590_v57  ;;  %732 = vmatpush1.msra.mxu0 %v461_v58  ;;  %v454_v12 = vcvt.s32.f32 %v198_v0  ;;  %v582_v13 = vcvt.s32.f32 %v326_v1  ;;  %v453_v14 = vcvt.s32.f32 %v197_v2  ;;  %v581_v15 = vcvt.s32.f32 %v325_v3  ;;  %v115_v0 = vld [vmem:[#allocation6 + $0x1b0] sm:$0xff] }
  0x45   :  { %809 = vmatpush1.msra.mxu1 %v589_v59  ;;  %733 = vmatprep.subr.mxu0 %v458_v6  ;;  %v194_v16 = vunpack.c.h.b16 %v63_v4  ;;  %v322_v17 = vunpack.c.h.b16 %v127_v5  ;;  %v193_v18 = vunpack.c.l.b16 %v63_v4  ;;  %v321_v19 = vunpack.c.l.b16 %v127_v5  ;;  %v179_v1 = vld [vmem:[#allocation6 + $0x3b0] sm:$0xff]  ;;  %v113_v6 = vld [vmem:[#allocation6 + $0x1a0] sm:$0xff] }
  0x46   :  { %810 = vmatprep.subr.mxu1 %v586_v7  ;;  %734 = vmatpush1.msra.mxu0 %v457_v8  ;;  %v190_v20 = vunpack.c.h.b16 %v61_v10  ;;  %v318_v21 = vunpack.c.h.b16 %v125_v11  ;;  %v189_v22 = vunpack.c.l.b16 %v61_v10  ;;  %v317_v23 = vunpack.c.l.b16 %v125_v11  ;;  %v177_v7 = vld [vmem:[#allocation6 + $0x3a0] sm:$0xff] }
  0x47   :  { %811 = vmatpush1.msra.mxu1 %v585_v9  ;;  %735 = vmatprep.subr.mxu0 %v454_v12  ;;  %v450_v26 = vcvt.s32.f32 %v194_v16  ;;  %v578_v27 = vcvt.s32.f32 %v322_v17  ;;  %v449_v28 = vcvt.s32.f32 %v193_v18  ;;  %v577_v29 = vcvt.s32.f32 %v321_v19 }
  0x48   :  { %812 = vmatprep.subr.mxu1 %v582_v13  ;;  %736 = vmatpush1.msra.mxu0 %v453_v14  ;;  %v446_v32 = vcvt.s32.f32 %v190_v20  ;;  %v574_v33 = vcvt.s32.f32 %v318_v21  ;;  %v445_v34 = vcvt.s32.f32 %v189_v22  ;;  %v573_v35 = vcvt.s32.f32 %v317_v23  ;;  %v111_v20 = vld [vmem:[#allocation6 + $0x190] sm:$0xff] }
  0x49   :  { %813 = vmatpush1.msra.mxu1 %v581_v15  ;;  %737 = vmatprep.subr.mxu0 %v450_v26  ;;  %v314_v36 = vunpack.c.h.b16 %v123_v24  ;;  %v442_v37 = vunpack.c.h.b16 %v187_v25  ;;  %v313_v38 = vunpack.c.l.b16 %v123_v24  ;;  %v441_v39 = vunpack.c.l.b16 %v187_v25  ;;  %v175_v21 = vld [vmem:[#allocation6 + $0x390] sm:$0xff]  ;;  %v109_v26 = vld [vmem:[#allocation6 + $0x180] sm:$0xff] }
  0x4a   :  { %814 = vmatprep.subr.mxu1 %v578_v27  ;;  %738 = vmatpush1.msra.mxu0 %v449_v28  ;;  %v310_v40 = vunpack.c.h.b16 %v121_v30  ;;  %v438_v41 = vunpack.c.h.b16 %v185_v31  ;;  %v309_v42 = vunpack.c.l.b16 %v121_v30  ;;  %v437_v43 = vunpack.c.l.b16 %v185_v31  ;;  %v173_v27 = vld [vmem:[#allocation6 + $0x380] sm:$0xff] }
  0x4b   :  { %815 = vmatpush1.msra.mxu1 %v577_v29  ;;  %739 = vmatprep.subr.mxu0 %v446_v32  ;;  %v570_v46 = vcvt.s32.f32 %v314_v36  ;;  %v698_v47 = vcvt.s32.f32 %v442_v37  ;;  %v569_v48 = vcvt.s32.f32 %v313_v38  ;;  %v697_v49 = vcvt.s32.f32 %v441_v39 }
  0x4c   :  { %816 = vmatprep.subr.mxu1 %v574_v33  ;;  %740 = vmatpush1.msra.mxu0 %v445_v34  ;;  %v566_v52 = vcvt.s32.f32 %v310_v40  ;;  %v694_v53 = vcvt.s32.f32 %v438_v41  ;;  %v565_v54 = vcvt.s32.f32 %v309_v42  ;;  %v693_v55 = vcvt.s32.f32 %v437_v43  ;;  %v107_v40 = vld [vmem:[#allocation6 + $0x170] sm:$0xff] }
  0x4d   :  { %817 = vmatpush1.msra.mxu1 %v573_v35  ;;  %741 = vmatprep.subr.mxu0 %v570_v46  ;;  %v306_v56 = vunpack.c.h.b16 %v119_v44  ;;  %v434_v57 = vunpack.c.h.b16 %v183_v45  ;;  %v305_v58 = vunpack.c.l.b16 %v119_v44  ;;  %v433_v59 = vunpack.c.l.b16 %v183_v45  ;;  %v171_v41 = vld [vmem:[#allocation6 + $0x370] sm:$0xff]  ;;  %v105_v46 = vld [vmem:[#allocation6 + $0x160] sm:$0xff] }
  0x4e   :  { %818 = vmatprep.subr.mxu1 %v698_v47  ;;  %742 = vmatpush2.msra.mxu0 %v569_v48  ;;  %v302_v60 = vunpack.c.h.b16 %v117_v50  ;;  %v430_v61 = vunpack.c.h.b16 %v181_v51  ;;  %v301_v62 = vunpack.c.l.b16 %v117_v50  ;;  %v429_v63 = vunpack.c.l.b16 %v181_v51  ;;  %v169_v47 = vld [vmem:[#allocation6 + $0x360] sm:$0xff] }
  0x4f   :  { %819 = vmatpush2.msra.mxu1 %v697_v49  ;;  %743 = vmatprep.subr.mxu0 %v566_v52  ;;  %v562_v2 = vcvt.s32.f32 %v306_v56  ;;  %v690_v3 = vcvt.s32.f32 %v434_v57  ;;  %v561_v4 = vcvt.s32.f32 %v305_v58  ;;  %v689_v5 = vcvt.s32.f32 %v433_v59 }
  0x50   :  { %820 = vmatprep.subr.mxu1 %v694_v53  ;;  %744 = vmatpush2.msra.mxu0 %v565_v54  ;;  %v558_v8 = vcvt.s32.f32 %v302_v60  ;;  %v686_v9 = vcvt.s32.f32 %v430_v61  ;;  %v557_v10 = vcvt.s32.f32 %v301_v62  ;;  %v685_v11 = vcvt.s32.f32 %v429_v63  ;;  %v103_v60 = vld [vmem:[#allocation6 + $0x150] sm:$0xff] }
  0x51   :  { %821 = vmatpush2.msra.mxu1 %v693_v55  ;;  %745 = vmatprep.subr.mxu0 %v562_v2  ;;  %v298_v12 = vunpack.c.h.b16 %v115_v0  ;;  %v426_v13 = vunpack.c.h.b16 %v179_v1  ;;  %v297_v14 = vunpack.c.l.b16 %v115_v0  ;;  %v425_v15 = vunpack.c.l.b16 %v179_v1  ;;  %v167_v61 = vld [vmem:[#allocation6 + $0x350] sm:$0xff]  ;;  %v101_v2 = vld [vmem:[#allocation6 + $0x140] sm:$0xff] }
  0x52   :  { %822 = vmatprep.subr.mxu1 %v690_v3  ;;  %746 = vmatpush2.msra.mxu0 %v561_v4  ;;  %v294_v16 = vunpack.c.h.b16 %v113_v6  ;;  %v422_v17 = vunpack.c.h.b16 %v177_v7  ;;  %v293_v18 = vunpack.c.l.b16 %v113_v6  ;;  %v421_v19 = vunpack.c.l.b16 %v177_v7  ;;  %v165_v3 = vld [vmem:[#allocation6 + $0x340] sm:$0xff] }
  0x53   :  { %823 = vmatpush2.msra.mxu1 %v689_v5  ;;  %747 = vmatprep.subr.mxu0 %v558_v8  ;;  %v554_v22 = vcvt.s32.f32 %v298_v12  ;;  %v682_v23 = vcvt.s32.f32 %v426_v13  ;;  %v553_v24 = vcvt.s32.f32 %v297_v14  ;;  %v681_v25 = vcvt.s32.f32 %v425_v15 }
  0x54   :  { %824 = vmatprep.subr.mxu1 %v686_v9  ;;  %748 = vmatpush2.msra.mxu0 %v557_v10  ;;  %v550_v28 = vcvt.s32.f32 %v294_v16  ;;  %v678_v29 = vcvt.s32.f32 %v422_v17  ;;  %v549_v30 = vcvt.s32.f32 %v293_v18  ;;  %v677_v31 = vcvt.s32.f32 %v421_v19  ;;  %v99_v16 = vld [vmem:[#allocation6 + $0x130] sm:$0xff] }
  0x55   :  { %825 = vmatpush2.msra.mxu1 %v685_v11  ;;  %749 = vmatprep.subr.mxu0 %v554_v22  ;;  %v290_v32 = vunpack.c.h.b16 %v111_v20  ;;  %v418_v33 = vunpack.c.h.b16 %v175_v21  ;;  %v289_v34 = vunpack.c.l.b16 %v111_v20  ;;  %v417_v35 = vunpack.c.l.b16 %v175_v21  ;;  %v163_v17 = vld [vmem:[#allocation6 + $0x330] sm:$0xff]  ;;  %v97_v22 = vld [vmem:[#allocation6 + $0x120] sm:$0xff] }
  0x56   :  { %826 = vmatprep.subr.mxu1 %v682_v23  ;;  %750 = vmatpush2.msra.mxu0 %v553_v24  ;;  %v286_v36 = vunpack.c.h.b16 %v109_v26  ;;  %v414_v37 = vunpack.c.h.b16 %v173_v27  ;;  %v285_v38 = vunpack.c.l.b16 %v109_v26  ;;  %v413_v39 = vunpack.c.l.b16 %v173_v27  ;;  %v161_v23 = vld [vmem:[#allocation6 + $0x320] sm:$0xff] }
  0x57   :  { %827 = vmatpush2.msra.mxu1 %v681_v25  ;;  %751 = vmatprep.subr.mxu0 %v550_v28  ;;  %v546_v42 = vcvt.s32.f32 %v290_v32  ;;  %v674_v43 = vcvt.s32.f32 %v418_v33  ;;  %v545_v44 = vcvt.s32.f32 %v289_v34  ;;  %v673_v45 = vcvt.s32.f32 %v417_v35 }
  0x58   :  { %828 = vmatprep.subr.mxu1 %v678_v29  ;;  %752 = vmatpush2.msra.mxu0 %v549_v30  ;;  %v542_v48 = vcvt.s32.f32 %v286_v36  ;;  %v670_v49 = vcvt.s32.f32 %v414_v37  ;;  %v541_v50 = vcvt.s32.f32 %v285_v38  ;;  %v669_v51 = vcvt.s32.f32 %v413_v39  ;;  %v95_v36 = vld [vmem:[#allocation6 + $0x110] sm:$0xff] }
  0x59   :  { %829 = vmatpush2.msra.mxu1 %v677_v31  ;;  %753 = vmatprep.subr.mxu0 %v546_v42  ;;  %v282_v52 = vunpack.c.h.b16 %v107_v40  ;;  %v410_v53 = vunpack.c.h.b16 %v171_v41  ;;  %v281_v54 = vunpack.c.l.b16 %v107_v40  ;;  %v409_v55 = vunpack.c.l.b16 %v171_v41  ;;  %v159_v37 = vld [vmem:[#allocation6 + $0x310] sm:$0xff]  ;;  %v93_v42 = vld [vmem:[#allocation6 + $0x100] sm:$0xff] }
  0x5a   :  { %830 = vmatprep.subr.mxu1 %v674_v43  ;;  %754 = vmatpush2.msra.mxu0 %v545_v44  ;;  %v278_v56 = vunpack.c.h.b16 %v105_v46  ;;  %v406_v57 = vunpack.c.h.b16 %v169_v47  ;;  %v277_v58 = vunpack.c.l.b16 %v105_v46  ;;  %v405_v59 = vunpack.c.l.b16 %v169_v47  ;;  %v157_v43 = vld [vmem:[#allocation6 + $0x300] sm:$0xff] }
  0x5b   :  { %831 = vmatpush2.msra.mxu1 %v673_v45  ;;  %755 = vmatprep.subr.mxu0 %v542_v48  ;;  %v538_v62 = vcvt.s32.f32 %v282_v52  ;;  %v666_v63 = vcvt.s32.f32 %v410_v53  ;;  %v537_v0 = vcvt.s32.f32 %v281_v54  ;;  %v665_v1 = vcvt.s32.f32 %v409_v55 }
  0x5c   :  { %832 = vmatprep.subr.mxu1 %v670_v49  ;;  %756 = vmatpush2.msra.mxu0 %v541_v50  ;;  %v534_v4 = vcvt.s32.f32 %v278_v56  ;;  %v662_v5 = vcvt.s32.f32 %v406_v57  ;;  %v533_v6 = vcvt.s32.f32 %v277_v58  ;;  %v661_v7 = vcvt.s32.f32 %v405_v59  ;;  %v92_v56 = vld [vmem:[#allocation6 + $0xf8] sm:$0xff] }
  0x5d   :  { %833 = vmatpush2.msra.mxu1 %v669_v51  ;;  %757 = vmatprep.subr.mxu0 %v538_v62  ;;  %v274_v8 = vunpack.c.h.b16 %v103_v60  ;;  %v402_v9 = vunpack.c.h.b16 %v167_v61  ;;  %v273_v10 = vunpack.c.l.b16 %v103_v60  ;;  %v401_v11 = vunpack.c.l.b16 %v167_v61  ;;  %v156_v57 = vld [vmem:[#allocation6 + $0x2f8] sm:$0xff]  ;;  %v90_v62 = vld [vmem:[#allocation6 + $0xe8] sm:$0xff] }
  0x5e   :  { %834 = vmatprep.subr.mxu1 %v666_v63  ;;  %758 = vmatpush2.msra.mxu0 %v537_v0  ;;  %v270_v12 = vunpack.c.h.b16 %v101_v2  ;;  %v398_v13 = vunpack.c.h.b16 %v165_v3  ;;  %v269_v14 = vunpack.c.l.b16 %v101_v2  ;;  %v397_v15 = vunpack.c.l.b16 %v165_v3  ;;  %v154_v63 = vld [vmem:[#allocation6 + $0x2e8] sm:$0xff] }
  0x5f   :  { %835 = vmatpush2.msra.mxu1 %v665_v1  ;;  %759 = vmatprep.subr.mxu0 %v534_v4  ;;  %v530_v18 = vcvt.s32.f32 %v274_v8  ;;  %v658_v19 = vcvt.s32.f32 %v402_v9  ;;  %v529_v20 = vcvt.s32.f32 %v273_v10  ;;  %v657_v21 = vcvt.s32.f32 %v401_v11  ;;  %v1210_v4 = vld [vmem:[#allocation3 + $0x8] sm:$0xff]  ;;  %v1214_v10 = vld [vmem:[#allocation3] sm:$0xff] }
  0x60   :  { %836 = vmatprep.subr.mxu1 %v662_v5  ;;  %760 = vmatpush2.msra.mxu0 %v533_v6  ;;  %v526_v24 = vcvt.s32.f32 %v270_v12  ;;  %v654_v25 = vcvt.s32.f32 %v398_v13  ;;  %v525_v26 = vcvt.s32.f32 %v269_v14  ;;  %v653_v27 = vcvt.s32.f32 %v397_v15  ;;  %v1212_v5 = vld [vmem:[#allocation3 + $0x18] sm:$0xff] }
  0x61   :  { %837 = vmatpush2.msra.mxu1 %v661_v7  ;;  %761 = vmatprep.subr.mxu0 %v530_v18  ;;  %v266_v28 = vunpack.c.h.b16 %v99_v16  ;;  %v394_v29 = vunpack.c.h.b16 %v163_v17  ;;  %v265_v30 = vunpack.c.l.b16 %v99_v16  ;;  %v393_v31 = vunpack.c.l.b16 %v163_v17  ;;  %v88_v15 = vld [vmem:[#allocation6 + $0xd8] sm:$0xff]  ;;  %v1216_v17 = vld [vmem:[#allocation3 + $0x10] sm:$0xff] }
  0x62   :  { %838 = vmatprep.subr.mxu1 %v658_v19  ;;  %762 = vmatpush2.msra.mxu0 %v529_v20  ;;  %v262_v32 = vunpack.c.h.b16 %v97_v22  ;;  %v390_v33 = vunpack.c.h.b16 %v161_v23  ;;  %v261_v34 = vunpack.c.l.b16 %v97_v22  ;;  %v389_v35 = vunpack.c.l.b16 %v161_v23  ;;  %v152_v16 = vld [vmem:[#allocation6 + $0x2d8] sm:$0xff]  ;;  %v86_v22 = vld [vmem:[#allocation6 + $0xc8] sm:$0xff] }
  0x63   :  { %839 = vmatpush2.msra.mxu1 %v657_v21  ;;  %763 = vmatprep.subr.mxu0 %v526_v24  ;;  %v522_v38 = vcvt.s32.f32 %v266_v28  ;;  %v650_v39 = vcvt.s32.f32 %v394_v29  ;;  %v521_v40 = vcvt.s32.f32 %v265_v30  ;;  %v649_v41 = vcvt.s32.f32 %v393_v31  ;;  %v150_v23 = vld [vmem:[#allocation6 + $0x2c8] sm:$0xff] }
  0x64   :  { %840 = vmatprep.subr.mxu1 %v654_v25  ;;  %764 = vmatpush2.msra.mxu0 %v525_v26  ;;  %v518_v44 = vcvt.s32.f32 %v262_v32  ;;  %v646_v45 = vcvt.s32.f32 %v390_v33  ;;  %v517_v46 = vcvt.s32.f32 %v261_v34  ;;  %v645_v47 = vcvt.s32.f32 %v389_v35 }
  0x65   :  { %841 = vmatpush2.msra.mxu1 %v653_v27  ;;  %765 = vmatprep.subr.mxu0 %v522_v38  ;;  %v258_v48 = vunpack.c.h.b16 %v95_v36  ;;  %v386_v49 = vunpack.c.h.b16 %v159_v37  ;;  %v257_v50 = vunpack.c.l.b16 %v95_v36  ;;  %v385_v51 = vunpack.c.l.b16 %v159_v37  ;;  %v84_v36 = vld [vmem:[#allocation6 + $0xb8] sm:$0xff] }
  0x66   :  { %842 = vmatprep.subr.mxu1 %v650_v39  ;;  %766 = vmatpush2.msra.mxu0 %v521_v40  ;;  %v254_v52 = vunpack.c.h.b16 %v93_v42  ;;  %v382_v53 = vunpack.c.h.b16 %v157_v43  ;;  %v253_v54 = vunpack.c.l.b16 %v93_v42  ;;  %v381_v55 = vunpack.c.l.b16 %v157_v43  ;;  %v148_v37 = vld [vmem:[#allocation6 + $0x2b8] sm:$0xff]  ;;  %v82_v42 = vld [vmem:[#allocation6 + $0xa8] sm:$0xff] }
  0x67   :  { %843 = vmatpush2.msra.mxu1 %v649_v41  ;;  %767 = vmatprep.subr.mxu0 %v518_v44  ;;  %v514_v58 = vcvt.s32.f32 %v258_v48  ;;  %v642_v59 = vcvt.s32.f32 %v386_v49  ;;  %v513_v60 = vcvt.s32.f32 %v257_v50  ;;  %v641_v61 = vcvt.s32.f32 %v385_v51  ;;  %v146_v43 = vld [vmem:[#allocation6 + $0x2a8] sm:$0xff] }
  0x68   :  { %844 = vmatprep.subr.mxu1 %v646_v45  ;;  %768 = vmatpush2.msra.mxu0 %v517_v46  ;;  %v510_v0 = vcvt.s32.f32 %v254_v52  ;;  %v638_v1 = vcvt.s32.f32 %v382_v53  ;;  %v509_v2 = vcvt.s32.f32 %v253_v54  ;;  %v637_v3 = vcvt.s32.f32 %v381_v55 }
  0x69   :  { %845 = vmatpush2.msra.mxu1 %v645_v47  ;;  %769 = vmatprep.subr.mxu0 %v514_v58  ;;  %v251_v6 = vunpack.c.l.b16 %v92_v56  ;;  %v252_v7 = vunpack.c.h.b16 %v92_v56  ;;  %v379_v8 = vunpack.c.l.b16 %v156_v57  ;;  %v380_v9 = vunpack.c.h.b16 %v156_v57  ;;  %v80_v56 = vld [vmem:[#allocation6 + $0x98] sm:$0xff] }
  0x6a   :  { %846 = vmatprep.subr.mxu1 %v642_v59  ;;  %770 = vmatpush2.msra.mxu0 %v513_v60  ;;  %v247_v11 = vunpack.c.l.b16 %v90_v62  ;;  %v248_v12 = vunpack.c.h.b16 %v90_v62  ;;  %v375_v13 = vunpack.c.l.b16 %v154_v63  ;;  %v376_v14 = vunpack.c.h.b16 %v154_v63  ;;  %v144_v57 = vld [vmem:[#allocation6 + $0x298] sm:$0xff]  ;;  %v78_v62 = vld [vmem:[#allocation6 + $0x88] sm:$0xff] }
  0x6b   :  { %847 = vmatpush2.msra.mxu1 %v641_v61  ;;  %771 = vmatprep.subr.mxu0 %v510_v0  ;;  %v507_v18 = vcvt.s32.f32 %v251_v6  ;;  %v508_v19 = vcvt.s32.f32 %v252_v7  ;;  %v635_v20 = vcvt.s32.f32 %v379_v8  ;;  %v636_v21 = vcvt.s32.f32 %v380_v9  ;;  %v142_v63 = vld [vmem:[#allocation6 + $0x288] sm:$0xff] }
  0x6c   :  { %848 = vmatprep.subr.mxu1 %v638_v1  ;;  %772 = vmatpush2.msra.mxu0 %v509_v2  ;;  %v503_v24 = vcvt.s32.f32 %v247_v11  ;;  %v504_v25 = vcvt.s32.f32 %v248_v12  ;;  %v631_v26 = vcvt.s32.f32 %v375_v13  ;;  %v632_v27 = vcvt.s32.f32 %v376_v14 }
  0x6d   :  { %773 = vmatprep.mubr.f32.mxu0 %v1210_v4  ;;  %849 = vmatpush2.msra.mxu1 %v637_v3  ;;  %v243_v28 = vunpack.c.l.b16 %v88_v15  ;;  %v244_v29 = vunpack.c.h.b16 %v88_v15  ;;  %v371_v30 = vunpack.c.l.b16 %v152_v16  ;;  %v372_v31 = vunpack.c.h.b16 %v152_v16  ;;  %v76_v15 = vld [vmem:[#allocation6 + $0x78] sm:$0xff] }
  0x6e   :  { %850 = vmatprep.mubr.f32.mxu1 %v1212_v5  ;;  %774 = vmatmul.mubr.f32.vlgmr.msra.gmra.mxu0 %v1214_v10  ;;  %v239_v32 = vunpack.c.l.b16 %v86_v22  ;;  %v240_v33 = vunpack.c.h.b16 %v86_v22  ;;  %v367_v34 = vunpack.c.l.b16 %v150_v23  ;;  %v368_v35 = vunpack.c.h.b16 %v150_v23  ;;  %v140_v16 = vld [vmem:[#allocation6 + $0x278] sm:$0xff]  ;;  %v74_v22 = vld [vmem:[#allocation6 + $0x68] sm:$0xff] }
  0x6f   :  { %851 = vmatmul.mubr.f32.vlgmr.msra.gmra.mxu1 %v1216_v17  ;;  %863 = vmatprep.subr.mxu0 %v508_v19  ;;  %v499_v38 = vcvt.s32.f32 %v243_v28  ;;  %v500_v39 = vcvt.s32.f32 %v244_v29  ;;  %v627_v40 = vcvt.s32.f32 %v371_v30  ;;  %v628_v41 = vcvt.s32.f32 %v372_v31  ;;  %v138_v23 = vld [vmem:[#allocation6 + $0x268] sm:$0xff] }
  0x70   :  { %940 = vmatprep.subr.mxu1 %v636_v21  ;;  %864 = vmatpush1.msra.mxu0 %v507_v18  ;;  %v495_v44 = vcvt.s32.f32 %v239_v32  ;;  %v496_v45 = vcvt.s32.f32 %v240_v33  ;;  %v623_v46 = vcvt.s32.f32 %v367_v34  ;;  %v624_v47 = vcvt.s32.f32 %v368_v35 }
  0x71   :  { %941 = vmatpush1.msra.mxu1 %v635_v20  ;;  %865 = vmatprep.subr.mxu0 %v504_v25  ;;  %v235_v48 = vunpack.c.l.b16 %v84_v36  ;;  %v236_v49 = vunpack.c.h.b16 %v84_v36  ;;  %v363_v50 = vunpack.c.l.b16 %v148_v37  ;;  %v364_v51 = vunpack.c.h.b16 %v148_v37  ;;  %v72_v36 = vld [vmem:[#allocation6 + $0x58] sm:$0xff] }
  0x72   :  { %942 = vmatprep.subr.mxu1 %v632_v27  ;;  %866 = vmatpush1.msra.mxu0 %v503_v24  ;;  %v231_v52 = vunpack.c.l.b16 %v82_v42  ;;  %v232_v53 = vunpack.c.h.b16 %v82_v42  ;;  %v359_v54 = vunpack.c.l.b16 %v146_v43  ;;  %v360_v55 = vunpack.c.h.b16 %v146_v43  ;;  %v136_v37 = vld [vmem:[#allocation6 + $0x258] sm:$0xff]  ;;  %v70_v42 = vld [vmem:[#allocation6 + $0x48] sm:$0xff] }
  0x73   :  { %943 = vmatpush1.msra.mxu1 %v631_v26  ;;  %867 = vmatprep.subr.mxu0 %v500_v39  ;;  %v491_v58 = vcvt.s32.f32 %v235_v48  ;;  %v492_v59 = vcvt.s32.f32 %v236_v49  ;;  %v619_v60 = vcvt.s32.f32 %v363_v50  ;;  %v620_v61 = vcvt.s32.f32 %v364_v51  ;;  %v134_v43 = vld [vmem:[#allocation6 + $0x248] sm:$0xff] }
  0x74   :  { %944 = vmatprep.subr.mxu1 %v628_v41  ;;  %868 = vmatpush1.msra.mxu0 %v499_v38  ;;  %v487_v0 = vcvt.s32.f32 %v231_v52  ;;  %v488_v1 = vcvt.s32.f32 %v232_v53  ;;  %v615_v2 = vcvt.s32.f32 %v359_v54  ;;  %v616_v3 = vcvt.s32.f32 %v360_v55 }
  0x75   :  { %945 = vmatpush1.msra.mxu1 %v627_v40  ;;  %869 = vmatprep.subr.mxu0 %v496_v45  ;;  %v227_v6 = vunpack.c.l.b16 %v80_v56  ;;  %v228_v7 = vunpack.c.h.b16 %v80_v56  ;;  %v355_v8 = vunpack.c.l.b16 %v144_v57  ;;  %v356_v9 = vunpack.c.h.b16 %v144_v57  ;;  %v68_v56 = vld [vmem:[#allocation6 + $0x38] sm:$0xff] }
  0x76   :  { %946 = vmatprep.subr.mxu1 %v624_v47  ;;  %870 = vmatpush1.msra.mxu0 %v495_v44  ;;  %v223_v11 = vunpack.c.l.b16 %v78_v62  ;;  %v224_v12 = vunpack.c.h.b16 %v78_v62  ;;  %v351_v13 = vunpack.c.l.b16 %v142_v63  ;;  %v352_v14 = vunpack.c.h.b16 %v142_v63  ;;  %v132_v57 = vld [vmem:[#allocation6 + $0x238] sm:$0xff]  ;;  %v66_v62 = vld [vmem:[#allocation6 + $0x28] sm:$0xff] }
  0x77   :  { %947 = vmatpush1.msra.mxu1 %v623_v46  ;;  %871 = vmatprep.subr.mxu0 %v492_v59  ;;  %v483_v18 = vcvt.s32.f32 %v227_v6  ;;  %v484_v19 = vcvt.s32.f32 %v228_v7  ;;  %v611_v20 = vcvt.s32.f32 %v355_v8  ;;  %v612_v21 = vcvt.s32.f32 %v356_v9  ;;  %v130_v63 = vld [vmem:[#allocation6 + $0x228] sm:$0xff] }
  0x78   :  { %948 = vmatprep.subr.mxu1 %v620_v61  ;;  %872 = vmatpush1.msra.mxu0 %v491_v58  ;;  %v479_v24 = vcvt.s32.f32 %v223_v11  ;;  %v480_v25 = vcvt.s32.f32 %v224_v12  ;;  %v607_v26 = vcvt.s32.f32 %v351_v13  ;;  %v608_v27 = vcvt.s32.f32 %v352_v14 }
  0x79   :  { %949 = vmatpush1.msra.mxu1 %v619_v60  ;;  %873 = vmatprep.subr.mxu0 %v488_v1  ;;  %v219_v28 = vunpack.c.l.b16 %v76_v15  ;;  %v220_v29 = vunpack.c.h.b16 %v76_v15  ;;  %v347_v30 = vunpack.c.l.b16 %v140_v16  ;;  %v348_v31 = vunpack.c.h.b16 %v140_v16  ;;  %v64_v15 = vld [vmem:[#allocation6 + $0x18] sm:$0xff] }
  0x7a   :  { %950 = vmatprep.subr.mxu1 %v616_v3  ;;  %874 = vmatpush1.msra.mxu0 %v487_v0  ;;  %v215_v32 = vunpack.c.l.b16 %v74_v22  ;;  %v216_v33 = vunpack.c.h.b16 %v74_v22  ;;  %v343_v34 = vunpack.c.l.b16 %v138_v23  ;;  %v344_v35 = vunpack.c.h.b16 %v138_v23  ;;  %v128_v16 = vld [vmem:[#allocation6 + $0x218] sm:$0xff]  ;;  %v62_v22 = vld [vmem:[#allocation6 + $0x8] sm:$0xff] }
  0x7b   :  { %951 = vmatpush1.msra.mxu1 %v615_v2  ;;  %875 = vmatprep.subr.mxu0 %v484_v19  ;;  %v475_v38 = vcvt.s32.f32 %v219_v28  ;;  %v476_v39 = vcvt.s32.f32 %v220_v29  ;;  %v603_v40 = vcvt.s32.f32 %v347_v30  ;;  %v604_v41 = vcvt.s32.f32 %v348_v31  ;;  %v126_v23 = vld [vmem:[#allocation6 + $0x208] sm:$0xff] }
  0x7c   :  { %952 = vmatprep.subr.mxu1 %v612_v21  ;;  %876 = vmatpush1.msra.mxu0 %v483_v18  ;;  %v471_v44 = vcvt.s32.f32 %v215_v32  ;;  %v472_v45 = vcvt.s32.f32 %v216_v33  ;;  %v599_v46 = vcvt.s32.f32 %v343_v34  ;;  %v600_v47 = vcvt.s32.f32 %v344_v35 }
  0x7d   :  { %953 = vmatpush1.msra.mxu1 %v611_v20  ;;  %877 = vmatprep.subr.mxu0 %v480_v25  ;;  %v211_v48 = vunpack.c.l.b16 %v72_v36  ;;  %v212_v49 = vunpack.c.h.b16 %v72_v36  ;;  %v339_v50 = vunpack.c.l.b16 %v136_v37  ;;  %v340_v51 = vunpack.c.h.b16 %v136_v37  ;;  %v124_v36 = vld [vmem:[#allocation6 + $0x1f8] sm:$0xff] }
  0x7e   :  { %954 = vmatprep.subr.mxu1 %v608_v27  ;;  %878 = vmatpush1.msra.mxu0 %v479_v24  ;;  %v207_v52 = vunpack.c.l.b16 %v70_v42  ;;  %v208_v53 = vunpack.c.h.b16 %v70_v42  ;;  %v335_v54 = vunpack.c.l.b16 %v134_v43  ;;  %v336_v55 = vunpack.c.h.b16 %v134_v43  ;;  %v188_v37 = vld [vmem:[#allocation6 + $0x3f8] sm:$0xff]  ;;  %v122_v42 = vld [vmem:[#allocation6 + $0x1e8] sm:$0xff] }
  0x7f   :  { %955 = vmatpush1.msra.mxu1 %v607_v26  ;;  %879 = vmatprep.subr.mxu0 %v476_v39  ;;  %v467_v58 = vcvt.s32.f32 %v211_v48  ;;  %v468_v59 = vcvt.s32.f32 %v212_v49  ;;  %v595_v60 = vcvt.s32.f32 %v339_v50  ;;  %v596_v61 = vcvt.s32.f32 %v340_v51  ;;  %v186_v43 = vld [vmem:[#allocation6 + $0x3e8] sm:$0xff] }
  0x80   :  { %956 = vmatprep.subr.mxu1 %v604_v41  ;;  %880 = vmatpush1.msra.mxu0 %v475_v38  ;;  %v463_v0 = vcvt.s32.f32 %v207_v52  ;;  %v464_v1 = vcvt.s32.f32 %v208_v53  ;;  %v591_v2 = vcvt.s32.f32 %v335_v54  ;;  %v592_v3 = vcvt.s32.f32 %v336_v55 }
  0x81   :  { %957 = vmatpush1.msra.mxu1 %v603_v40  ;;  %881 = vmatprep.subr.mxu0 %v472_v45  ;;  %v203_v6 = vunpack.c.l.b16 %v68_v56  ;;  %v204_v7 = vunpack.c.h.b16 %v68_v56  ;;  %v331_v8 = vunpack.c.l.b16 %v132_v57  ;;  %v332_v9 = vunpack.c.h.b16 %v132_v57  ;;  %v120_v56 = vld [vmem:[#allocation6 + $0x1d8] sm:$0xff] }
  0x82   :  { %958 = vmatprep.subr.mxu1 %v600_v47  ;;  %882 = vmatpush1.msra.mxu0 %v471_v44  ;;  %v199_v11 = vunpack.c.l.b16 %v66_v62  ;;  %v200_v12 = vunpack.c.h.b16 %v66_v62  ;;  %v327_v13 = vunpack.c.l.b16 %v130_v63  ;;  %v328_v14 = vunpack.c.h.b16 %v130_v63  ;;  %v184_v57 = vld [vmem:[#allocation6 + $0x3d8] sm:$0xff]  ;;  %v118_v62 = vld [vmem:[#allocation6 + $0x1c8] sm:$0xff] }
  0x83   :  { %959 = vmatpush1.msra.mxu1 %v599_v46  ;;  %883 = vmatprep.subr.mxu0 %v468_v59  ;;  %v459_v18 = vcvt.s32.f32 %v203_v6  ;;  %v460_v19 = vcvt.s32.f32 %v204_v7  ;;  %v587_v20 = vcvt.s32.f32 %v331_v8  ;;  %v588_v21 = vcvt.s32.f32 %v332_v9  ;;  %v182_v63 = vld [vmem:[#allocation6 + $0x3c8] sm:$0xff] }
  0x84   :  { %960 = vmatprep.subr.mxu1 %v596_v61  ;;  %884 = vmatpush1.msra.mxu0 %v467_v58  ;;  %v455_v24 = vcvt.s32.f32 %v199_v11  ;;  %v456_v25 = vcvt.s32.f32 %v200_v12  ;;  %v583_v26 = vcvt.s32.f32 %v327_v13  ;;  %v584_v27 = vcvt.s32.f32 %v328_v14 }
  0x85   :  { %961 = vmatpush1.msra.mxu1 %v595_v60  ;;  %885 = vmatprep.subr.mxu0 %v464_v1  ;;  %v195_v28 = vunpack.c.l.b16 %v64_v15  ;;  %v196_v29 = vunpack.c.h.b16 %v64_v15  ;;  %v323_v30 = vunpack.c.l.b16 %v128_v16  ;;  %v324_v31 = vunpack.c.h.b16 %v128_v16  ;;  %v116_v15 = vld [vmem:[#allocation6 + $0x1b8] sm:$0xff] }
  0x86   :  { %962 = vmatprep.subr.mxu1 %v592_v3  ;;  %886 = vmatpush1.msra.mxu0 %v463_v0  ;;  %v191_v32 = vunpack.c.l.b16 %v62_v22  ;;  %v192_v33 = vunpack.c.h.b16 %v62_v22  ;;  %v319_v34 = vunpack.c.l.b16 %v126_v23  ;;  %v320_v35 = vunpack.c.h.b16 %v126_v23  ;;  %v180_v16 = vld [vmem:[#allocation6 + $0x3b8] sm:$0xff]  ;;  %v114_v22 = vld [vmem:[#allocation6 + $0x1a8] sm:$0xff] }
  0x87   :  { %963 = vmatpush1.msra.mxu1 %v591_v2  ;;  %887 = vmatprep.subr.mxu0 %v460_v19  ;;  %v451_v38 = vcvt.s32.f32 %v195_v28  ;;  %v452_v39 = vcvt.s32.f32 %v196_v29  ;;  %v579_v40 = vcvt.s32.f32 %v323_v30  ;;  %v580_v41 = vcvt.s32.f32 %v324_v31  ;;  %v178_v23 = vld [vmem:[#allocation6 + $0x3a8] sm:$0xff] }
  0x88   :  { %964 = vmatprep.subr.mxu1 %v588_v21  ;;  %888 = vmatpush1.msra.mxu0 %v459_v18  ;;  %v447_v44 = vcvt.s32.f32 %v191_v32  ;;  %v448_v45 = vcvt.s32.f32 %v192_v33  ;;  %v575_v46 = vcvt.s32.f32 %v319_v34  ;;  %v576_v47 = vcvt.s32.f32 %v320_v35 }
  0x89   :  { %965 = vmatpush1.msra.mxu1 %v587_v20  ;;  %889 = vmatprep.subr.mxu0 %v456_v25  ;;  %v315_v48 = vunpack.c.l.b16 %v124_v36  ;;  %v316_v49 = vunpack.c.h.b16 %v124_v36  ;;  %v443_v50 = vunpack.c.l.b16 %v188_v37  ;;  %v444_v51 = vunpack.c.h.b16 %v188_v37  ;;  %v112_v36 = vld [vmem:[#allocation6 + $0x198] sm:$0xff] }
  0x8a   :  { %966 = vmatprep.subr.mxu1 %v584_v27  ;;  %890 = vmatpush1.msra.mxu0 %v455_v24  ;;  %v311_v52 = vunpack.c.l.b16 %v122_v42  ;;  %v312_v53 = vunpack.c.h.b16 %v122_v42  ;;  %v439_v54 = vunpack.c.l.b16 %v186_v43  ;;  %v440_v55 = vunpack.c.h.b16 %v186_v43  ;;  %v176_v37 = vld [vmem:[#allocation6 + $0x398] sm:$0xff]  ;;  %v110_v42 = vld [vmem:[#allocation6 + $0x188] sm:$0xff] }
  0x8b   :  { %967 = vmatpush1.msra.mxu1 %v583_v26  ;;  %891 = vmatprep.subr.mxu0 %v452_v39  ;;  %v571_v58 = vcvt.s32.f32 %v315_v48  ;;  %v572_v59 = vcvt.s32.f32 %v316_v49  ;;  %v699_v60 = vcvt.s32.f32 %v443_v50  ;;  %v700_v61 = vcvt.s32.f32 %v444_v51  ;;  %v174_v43 = vld [vmem:[#allocation6 + $0x388] sm:$0xff] }
  0x8c   :  { %968 = vmatprep.subr.mxu1 %v580_v41  ;;  %892 = vmatpush1.msra.mxu0 %v451_v38  ;;  %v567_v0 = vcvt.s32.f32 %v311_v52  ;;  %v568_v1 = vcvt.s32.f32 %v312_v53  ;;  %v695_v2 = vcvt.s32.f32 %v439_v54  ;;  %v696_v3 = vcvt.s32.f32 %v440_v55 }
  0x8d   :  { %969 = vmatpush1.msra.mxu1 %v579_v40  ;;  %893 = vmatprep.subr.mxu0 %v448_v45  ;;  %v307_v6 = vunpack.c.l.b16 %v120_v56  ;;  %v308_v7 = vunpack.c.h.b16 %v120_v56  ;;  %v435_v8 = vunpack.c.l.b16 %v184_v57  ;;  %v436_v9 = vunpack.c.h.b16 %v184_v57  ;;  %v108_v56 = vld [vmem:[#allocation6 + $0x178] sm:$0xff] }
  0x8e   :  { %970 = vmatprep.subr.mxu1 %v576_v47  ;;  %894 = vmatpush1.msra.mxu0 %v447_v44  ;;  %v303_v11 = vunpack.c.l.b16 %v118_v62  ;;  %v304_v12 = vunpack.c.h.b16 %v118_v62  ;;  %v431_v13 = vunpack.c.l.b16 %v182_v63  ;;  %v432_v14 = vunpack.c.h.b16 %v182_v63  ;;  %v172_v57 = vld [vmem:[#allocation6 + $0x378] sm:$0xff]  ;;  %v106_v62 = vld [vmem:[#allocation6 + $0x168] sm:$0xff] }
  0x8f   :  { %971 = vmatpush1.msra.mxu1 %v575_v46  ;;  %895 = vmatprep.subr.mxu0 %v572_v59  ;;  %v563_v18 = vcvt.s32.f32 %v307_v6  ;;  %v564_v19 = vcvt.s32.f32 %v308_v7  ;;  %v691_v20 = vcvt.s32.f32 %v435_v8  ;;  %v692_v21 = vcvt.s32.f32 %v436_v9  ;;  %v170_v63 = vld [vmem:[#allocation6 + $0x368] sm:$0xff] }
  0x90   :  { %972 = vmatprep.subr.mxu1 %v700_v61  ;;  %896 = vmatpush2.msra.mxu0 %v571_v58  ;;  %v559_v24 = vcvt.s32.f32 %v303_v11  ;;  %v560_v25 = vcvt.s32.f32 %v304_v12  ;;  %v687_v26 = vcvt.s32.f32 %v431_v13  ;;  %v688_v27 = vcvt.s32.f32 %v432_v14 }
  0x91   :  { %973 = vmatpush2.msra.mxu1 %v699_v60  ;;  %897 = vmatprep.subr.mxu0 %v568_v1  ;;  %v299_v28 = vunpack.c.l.b16 %v116_v15  ;;  %v300_v29 = vunpack.c.h.b16 %v116_v15  ;;  %v427_v30 = vunpack.c.l.b16 %v180_v16  ;;  %v428_v31 = vunpack.c.h.b16 %v180_v16  ;;  %v104_v15 = vld [vmem:[#allocation6 + $0x158] sm:$0xff] }
  0x92   :  { %974 = vmatprep.subr.mxu1 %v696_v3  ;;  %898 = vmatpush2.msra.mxu0 %v567_v0  ;;  %v295_v32 = vunpack.c.l.b16 %v114_v22  ;;  %v296_v33 = vunpack.c.h.b16 %v114_v22  ;;  %v423_v34 = vunpack.c.l.b16 %v178_v23  ;;  %v424_v35 = vunpack.c.h.b16 %v178_v23  ;;  %v168_v16 = vld [vmem:[#allocation6 + $0x358] sm:$0xff]  ;;  %v102_v22 = vld [vmem:[#allocation6 + $0x148] sm:$0xff] }
  0x93   :  { %975 = vmatpush2.msra.mxu1 %v695_v2  ;;  %899 = vmatprep.subr.mxu0 %v564_v19  ;;  %v555_v38 = vcvt.s32.f32 %v299_v28  ;;  %v556_v39 = vcvt.s32.f32 %v300_v29  ;;  %v683_v40 = vcvt.s32.f32 %v427_v30  ;;  %v684_v41 = vcvt.s32.f32 %v428_v31  ;;  %v166_v23 = vld [vmem:[#allocation6 + $0x348] sm:$0xff] }
  0x94   :  { %976 = vmatprep.subr.mxu1 %v692_v21  ;;  %900 = vmatpush2.msra.mxu0 %v563_v18  ;;  %v551_v44 = vcvt.s32.f32 %v295_v32  ;;  %v552_v45 = vcvt.s32.f32 %v296_v33  ;;  %v679_v46 = vcvt.s32.f32 %v423_v34  ;;  %v680_v47 = vcvt.s32.f32 %v424_v35 }
  0x95   :  { %977 = vmatpush2.msra.mxu1 %v691_v20  ;;  %901 = vmatprep.subr.mxu0 %v560_v25  ;;  %v291_v48 = vunpack.c.l.b16 %v112_v36  ;;  %v292_v49 = vunpack.c.h.b16 %v112_v36  ;;  %v419_v50 = vunpack.c.l.b16 %v176_v37  ;;  %v420_v51 = vunpack.c.h.b16 %v176_v37  ;;  %v100_v36 = vld [vmem:[#allocation6 + $0x138] sm:$0xff] }
  0x96   :  { %978 = vmatprep.subr.mxu1 %v688_v27  ;;  %902 = vmatpush2.msra.mxu0 %v559_v24  ;;  %v287_v52 = vunpack.c.l.b16 %v110_v42  ;;  %v288_v53 = vunpack.c.h.b16 %v110_v42  ;;  %v415_v54 = vunpack.c.l.b16 %v174_v43  ;;  %v416_v55 = vunpack.c.h.b16 %v174_v43  ;;  %v164_v37 = vld [vmem:[#allocation6 + $0x338] sm:$0xff] }
  0x97   :  { %979 = vmatpush2.msra.mxu1 %v687_v26  ;;  %903 = vmatprep.subr.mxu0 %v556_v39  ;;  %v547_v58 = vcvt.s32.f32 %v291_v48  ;;  %v548_v59 = vcvt.s32.f32 %v292_v49  ;;  %v675_v60 = vcvt.s32.f32 %v419_v50  ;;  %v676_v61 = vcvt.s32.f32 %v420_v51 }
  0x98   :  { %980 = vmatprep.subr.mxu1 %v684_v41  ;;  %904 = vmatpush2.msra.mxu0 %v555_v38  ;;  %v543_v0 = vcvt.s32.f32 %v287_v52  ;;  %v544_v1 = vcvt.s32.f32 %v288_v53  ;;  %v671_v2 = vcvt.s32.f32 %v415_v54  ;;  %v672_v3 = vcvt.s32.f32 %v416_v55  ;;  %v96_v52 = vld [vmem:[#allocation6 + $0x118] sm:$0xff] }
  0x99   :  { %981 = vmatpush2.msra.mxu1 %v683_v40  ;;  %905 = vmatprep.subr.mxu0 %v552_v45  ;;  %v283_v6 = vunpack.c.l.b16 %v108_v56  ;;  %v284_v7 = vunpack.c.h.b16 %v108_v56  ;;  %v411_v8 = vunpack.c.l.b16 %v172_v57  ;;  %v412_v9 = vunpack.c.h.b16 %v172_v57  ;;  %v162_v45 = vld [vmem:[#allocation6 + $0x328] sm:$0xff]  ;;  %v160_v53 = vld [vmem:[#allocation6 + $0x318] sm:$0xff] }
  0x9a   :  { %982 = vmatprep.subr.mxu1 %v680_v47  ;;  %906 = vmatpush2.msra.mxu0 %v551_v44  ;;  %v279_v11 = vunpack.c.l.b16 %v106_v62  ;;  %v280_v12 = vunpack.c.h.b16 %v106_v62  ;;  %v407_v13 = vunpack.c.l.b16 %v170_v63  ;;  %v408_v14 = vunpack.c.h.b16 %v170_v63  ;;  %v98_v44 = vld [vmem:[#allocation6 + $0x128] sm:$0xff] }
  0x9b   :  { %983 = vmatpush2.msra.mxu1 %v679_v46  ;;  %907 = vmatprep.subr.mxu0 %v548_v59  ;;  %v539_v18 = vcvt.s32.f32 %v283_v6  ;;  %v540_v19 = vcvt.s32.f32 %v284_v7  ;;  %v667_v20 = vcvt.s32.f32 %v411_v8  ;;  %v668_v21 = vcvt.s32.f32 %v412_v9  ;;  %v705_v8 = vld [vmem:[#allocation3 + $0x20] sm:$0xff]  ;;  %v707_v9 = vld [vmem:[#allocation3 + $0x30] sm:$0xff] }
  0x9c   :  { %984 = vmatprep.subr.mxu1 %v676_v61  ;;  %908 = vmatpush2.msra.mxu0 %v547_v58  ;;  %v535_v24 = vcvt.s32.f32 %v279_v11  ;;  %v536_v25 = vcvt.s32.f32 %v280_v12  ;;  %v663_v26 = vcvt.s32.f32 %v407_v13  ;;  %v664_v27 = vcvt.s32.f32 %v408_v14  ;;  %v158_v61 = vld [vmem:[#allocation6 + $0x308] sm:$0xff] }
  0x9d   :  { %985 = vmatpush2.msra.mxu1 %v675_v60  ;;  %909 = vmatprep.subr.mxu0 %v544_v1  ;;  %v275_v28 = vunpack.c.l.b16 %v104_v15  ;;  %v276_v29 = vunpack.c.h.b16 %v104_v15  ;;  %v403_v30 = vunpack.c.l.b16 %v168_v16  ;;  %v404_v31 = vunpack.c.h.b16 %v168_v16  ;;  %v94_v60 = vld [vmem:[#allocation6 + $0x108] sm:$0xff]  ;;  %v708_v1 = vld [vmem:[#allocation3 + $0x38] sm:$0xff] }
  0x9e   :  { %986 = vmatprep.subr.mxu1 %v672_v3  ;;  %910 = vmatpush2.msra.mxu0 %v543_v0  ;;  %v271_v32 = vunpack.c.l.b16 %v102_v22  ;;  %v272_v33 = vunpack.c.h.b16 %v102_v22  ;;  %v399_v34 = vunpack.c.l.b16 %v166_v23  ;;  %v400_v35 = vunpack.c.h.b16 %v166_v23  ;;  %v706_v0 = vld [vmem:[#allocation3 + $0x28] sm:$0xff] }
  0x9f   :  { %987 = vmatpush2.msra.mxu1 %v671_v2  ;;  %911 = vmatprep.subr.mxu0 %v540_v19  ;;  %v532_v38 = vcvt.s32.f32 %v276_v29  ;;  %v660_v39 = vcvt.s32.f32 %v404_v31  ;;  %v531_v40 = vcvt.s32.f32 %v275_v28  ;;  %v659_v41 = vcvt.s32.f32 %v403_v30 }
  0xa0   :  { %988 = vmatprep.subr.mxu1 %v668_v21  ;;  %912 = vmatpush2.msra.mxu0 %v539_v18  ;;  %v528_v42 = vcvt.s32.f32 %v272_v33  ;;  %v656_v43 = vcvt.s32.f32 %v400_v35  ;;  %v267_v46 = vunpack.c.l.b16 %v100_v36  ;;  %v268_v47 = vunpack.c.h.b16 %v100_v36  ;;  %v1027_v35 = vld [vmem:[#allocation8 + $0x8] sm:$0xff] }
  0xa1   :  { %989 = vmatpush2.msra.mxu1 %v667_v20  ;;  %913 = vmatprep.subr.mxu0 %v536_v25  ;;  %v395_v48 = vunpack.c.l.b16 %v164_v37  ;;  %v396_v49 = vunpack.c.h.b16 %v164_v37  ;;  %v527_v50 = vcvt.s32.f32 %v271_v32  ;;  %v655_v51 = vcvt.s32.f32 %v399_v34  ;;  %v1026_v32 = vld [vmem:[#allocation8] sm:$0xff] }
  0xa2   :  { %990 = vmatprep.subr.mxu1 %v664_v27  ;;  %914 = vmatpush2.msra.mxu0 %v535_v24  ;;  %v524_v54 = vcvt.s32.f32 %v268_v47  ;;  %v264_v56 = vunpack.c.h.b16 %v98_v44  ;;  %v392_v57 = vunpack.c.h.b16 %v162_v45  ;;  %v263_v58 = vunpack.c.l.b16 %v98_v44 }
  0xa3   :  { %991 = vmatpush2.msra.mxu1 %v663_v26  ;;  %915 = vmatprep.subr.mxu0 %v532_v38  ;;  %v652_v55 = vcvt.s32.f32 %v396_v49  ;;  %v391_v59 = vunpack.c.l.b16 %v162_v45  ;;  %v523_v62 = vcvt.s32.f32 %v267_v46  ;;  %v651_v63 = vcvt.s32.f32 %v395_v48  ;;  %v1031_v45 = vld [vmem:[#allocation8 + $0x28] sm:$0xff] }
  0xa4   :  { %992 = vmatprep.subr.mxu1 %v660_v39  ;;  %916 = vmatpush2.msra.mxu0 %v531_v40  ;;  %v260_v2 = vunpack.c.h.b16 %v96_v52  ;;  %v388_v3 = vunpack.c.h.b16 %v160_v53  ;;  %v259_v6 = vunpack.c.l.b16 %v96_v52  ;;  %v387_v7 = vunpack.c.l.b16 %v160_v53  ;;  %v1030_v40 = vld [vmem:[#allocation8 + $0x20] sm:$0xff]  ;;  %v1028_v52 = vld [vmem:[#allocation8 + $0x10] sm:$0xff] }
  0xa5   :  { %993 = vmatpush2.msra.mxu1 %v659_v41  ;;  %917 = vmatprep.subr.mxu0 %v528_v42  ;;  %v520_v11 = vcvt.s32.f32 %v264_v56  ;;  %v648_v12 = vcvt.s32.f32 %v392_v57  ;;  %v256_v13 = vunpack.c.h.b16 %v94_v60  ;;  %v384_v14 = vunpack.c.h.b16 %v158_v61  ;;  %v1029_v57 = vld [vmem:[#allocation8 + $0x18] sm:$0xff] }
  0xa6   :  { %994 = vmatprep.subr.mxu1 %v656_v43  ;;  %918 = vmatpush2.msra.mxu0 %v527_v50  ;;  %v519_v15 = vcvt.s32.f32 %v263_v58  ;;  %v647_v16 = vcvt.s32.f32 %v391_v59  ;;  %v255_v18 = vunpack.c.l.b16 %v94_v60  ;;  %v516_v19 = vcvt.s32.f32 %v260_v2 }
  0xa7   :  { %995 = vmatpush2.msra.mxu1 %v655_v51  ;;  %919 = vmatprep.subr.mxu0 %v524_v54  ;;  %v644_v20 = vcvt.s32.f32 %v388_v3  ;;  %v383_v21 = vunpack.c.l.b16 %v158_v61  ;;  %v515_v22 = vcvt.s32.f32 %v259_v6  ;;  %v643_v23 = vcvt.s32.f32 %v387_v7  ;;  %v1033_v7 = vld [vmem:[#allocation8 + $0x38] sm:$0xff] }
  0xa8   :  { %996 = vmatprep.subr.mxu1 %v652_v55  ;;  %779 = vmatprep.mubr.f32.mxu0 %v706_v0  ;;  %v512_v24 = vcvt.s32.f32 %v256_v13  ;;  %v640_v25 = vcvt.s32.f32 %v384_v14  ;;  %v511_v26 = vcvt.s32.f32 %v255_v18  ;;  %v1017_v30 = vstv %s1235_s0  ;;  %s1169_s0 = smov [#allocation9]  }
  0xa9   :  { %856 = vmatprep.mubr.f32.mxu1 %v708_v1  ;;  %920 = vmatpush2.msra.mxu0 %v523_v62  ;;  %v639_v27 = vcvt.s32.f32 %v383_v21  ;;  %s1055_s7 = sshll.u32 %s1169_s0, 4  ;;  %s1056_s7 = int_to_ptr.vmem [resolvable:$true] %s1055_s7 }
  0xaa   :  { %997 = vmatpush2.msra.mxu1 %v651_v63  ;;  %780 = vmatmul.mubr.f32.gmra.mxu0 %v705_v8  ;;  %v1032_v63 = vld [vmem:[#allocation8 + $0x30] sm:$0xff]  ;;  %s1136_s8 = scalar_lea.vmem %s1056_s7, 1024  ;;  %p1141_p2 = scmp.lt.s32.totalorder %s1056_s7, %s1056_s7 }
  0xab   :  { %857 = vmatmul.mubr.f32.gmra.mxu1 %v707_v9  ;;  %921 = vmatprep.subr.mxu0 %v520_v11  ;;  %p1137_p1 = scmp.ne.s32.totalorder %s1056_s7, %s1136_s8  ;;  %p1142_p3 = scmp.lt.s32.totalorder %s1136_s8, %s1136_s8 }
  0xac   :  { %998 = vmatprep.subr.mxu1 %v648_v12  ;;  %922 = vmatpush2.msra.mxu0 %v519_v15 }
  0xad   :  { %999 = vmatpush2.msra.mxu1 %v647_v16  ;;  %923 = vmatprep.subr.mxu0 %v516_v19  ;;  %p1143_p4 = por %p1142_p3, %p1141_p2 }
  0xae   :  { %1000 = vmatprep.subr.mxu1 %v644_v20  ;;  %924 = vmatpush2.msra.mxu0 %v515_v22 }
  0xaf   :  { %1001 = vmatpush2.msra.mxu1 %v643_v23  ;;  %925 = vmatprep.subr.mxu0 %v512_v24  ;;  %p1144_p5 = pnand %p1143_p4, %p1137_p1 }
  0xb0   :  { %1002 = vmatprep.subr.mxu1 %v640_v25  ;;  %926 = vmatpush2.msra.mxu0 %v511_v26 }
  0xb1   :  { %927 = vmatprep.mubr.f32.mxu0 %v1210_v4  ;;  %1003 = vmatpush2.msra.mxu1 %v639_v27 }
  0xb2   :  { %1004 = vmatprep.mubr.f32.mxu1 %v1212_v5  ;;  %928 = vmatmul.mubr.f32.vlgmr.msra.gmra.mxu0 %v1214_v10 }
  0xb3   :  { %1005 = vmatmul.mubr.f32.vlgmr.msra.gmra.mxu1 %v1216_v17  ;;  %933 = vmatprep.mubr.f32.mxu0 %v706_v0 }
  0xb4   :  { %1010 = vmatprep.mubr.f32.mxu1 %v708_v1 }
  0xb6   :  { %934 = vmatmul.mubr.f32.gmra.mxu0 %v705_v8 }
  0xb7   :  { %1011 = vmatmul.mubr.f32.gmra.mxu1 %v707_v9 }
 0x12e   :  { %v775_v28 = vpop.f32.mrf.mxu0 }
 0x12f   :  { %v852_v29 = vpop.f32.mrf.mxu1 }
 0x130   :  { %v853_v31 = vadd.f32 %v852_v29, %v775_v28  ;;  %v777_v4 = vpop.f32.mrf.mxu0 }
 0x131   :  { %v854_v33 = vpop.f32.mrf.mxu1 }
 0x132   :  { %v1018_v34 = vmul.f32 %v1017_v30, %v853_v31  ;;  %v855_v5 = vadd.f32 %v854_v33, %v777_v4 }
 0x134   :  { %v1034_v10 = vadd.f32 %v1026_v32, %v1018_v34  ;;  %v1019_v36 = vmul.f32 %v1017_v30, %v855_v5 }
 0x136   :  { %1042 = vst [vmem:[#allocation9] sm:$0xff] %v1034_v10  ;;  %v1035_v17 = vadd.f32 %v1027_v35, %v1019_v36 }
 0x138   :  { %1043 = vst [vmem:[#allocation9 + $0x8] sm:$0xff] %v1035_v17 }
 0x16a   :  { %v781_v37 = vpop.f32.mrf.mxu0 }
 0x16b   :  { %v858_v38 = vpop.f32.mrf.mxu1 }
 0x16c   :  { %v859_v39 = vadd.f32 %v858_v38, %v781_v37  ;;  %v783_v41 = vpop.f32.mrf.mxu0 }
 0x16d   :  { %v860_v42 = vpop.f32.mrf.mxu1 }
 0x16e   :  { %v1022_v43 = vmul.f32 %v1017_v30, %v859_v39  ;;  %v861_v44 = vadd.f32 %v860_v42, %v783_v41 }
 0x170   :  { %v1038_v46 = vadd.f32 %v1030_v40, %v1022_v43  ;;  %v1023_v47 = vmul.f32 %v1017_v30, %v861_v44 }
 0x172   :  { %1046 = vst [vmem:[#allocation9 + $0x20] sm:$0xff] %v1038_v46  ;;  %v1039_v48 = vadd.f32 %v1031_v45, %v1023_v47  ;;  %v929_v49 = vpop.f32.mrf.mxu0 }
 0x173   :  { %v1006_v50 = vpop.f32.mrf.mxu1 }
 0x174   :  { %1047 = vst [vmem:[#allocation9 + $0x28] sm:$0xff] %v1039_v48  ;;  %v1007_v51 = vadd.f32 %v1006_v50, %v929_v49  ;;  %v931_v53 = vpop.f32.mrf.mxu0 }
 0x175   :  { %v1008_v54 = vpop.f32.mrf.mxu1 }
 0x176   :  { %v1020_v55 = vmul.f32 %v1017_v30, %v1007_v51  ;;  %v1009_v56 = vadd.f32 %v1008_v54, %v931_v53  ;;  %v935_v58 = vpop.f32.mrf.mxu0 }
 0x177   :  { %v1012_v59 = vpop.f32.mrf.mxu1 }
 0x178   :  { %v1036_v60 = vadd.f32 %v1028_v52, %v1020_v55  ;;  %v1021_v61 = vmul.f32 %v1017_v30, %v1009_v56  ;;  %v1013_v62 = vadd.f32 %v1012_v59, %v935_v58  ;;  %v937_v0 = vpop.f32.mrf.mxu0 }
 0x179   :  { %v1014_v1 = vpop.f32.mrf.mxu1 }
 0x17a   :  { %1044 = vst [vmem:[#allocation9 + $0x10] sm:$0xff] %v1036_v60  ;;  %v1037_v2 = vadd.f32 %v1029_v57, %v1021_v61  ;;  %v1024_v3 = vmul.f32 %v1017_v30, %v1013_v62  ;;  %v1015_v6 = vadd.f32 %v1014_v1, %v937_v0 }
 0x17c   :  { %1045 = vst [vmem:[#allocation9 + $0x18] sm:$0xff] %v1037_v2  ;;  %v1040_v8 = vadd.f32 %v1032_v63, %v1024_v3  ;;  %v1025_v9 = vmul.f32 %v1017_v30, %v1015_v6 }
 0x17e   :  { %1048 = vst [vmem:[#allocation9 + $0x30] sm:$0xff] %v1040_v8  ;;  %v1041_v11 = vadd.f32 %v1033_v7, %v1025_v9 }
 0x180   :  { %1049 = vst [vmem:[#allocation9 + $0x38] sm:$0xff] %v1041_v11 }
 0x181   :  { %1147 = shalt.err (!%p1144_p5)
}
 0x182   :  { %1061 = dma.vmem_to_hbm [thread:$0]  %s1056_s7, 1024, %s1239_s4, [#allocation5], %s1166_s25, %s1166_s25, %s1167_s26  }
 0x183   :  { %1160 = dma.done.wait [#allocation5], 1024  }
 0x184   :  { %1161 = vsyncadd [#allocation5], 4294966272 }
 0x185   :  { %1065 = vsyncpa [#allocation4], 1 }
 0x186   :  { %1066 = vsyncpa [#allocation7], 1 }
 0x187   :  { %1067 = vsyncpa [#allocation5], 1 }

</bundles_post_ra>
